<compile_context>
chip_gen: v6e
topology: v6e:2x2x1
jax: 0.10.0
libtpu: 0.0.40
codegen_flags: <defaults>
</compile_context>

<pallas_src>
import math
import functools

import jax
import jax.numpy as jnp
from jax.experimental import pallas as pl
from jax.experimental.pallas import tpu as pltpu


# ----------------------------------------------------------------------------
# Model hyper-parameters (synthetic mini StableDiffusion, deterministic weights)
# ----------------------------------------------------------------------------
PATCH = 4          # VAE downsampling factor (SD uses 8; shrunk for small shapes)
LAT_C = 4          # SD latent channels
HID_C = 32         # UNet hidden width
CTX_D = 32         # text-embedding dim (SD2.1 uses 1024)
NUM_TRAIN_TIMESTEPS = 1000
VAE_SCALE = 0.18215


def init_params(key):
    ks = jax.random.split(key, 10)
    s = 0.02
    bf = jnp.bfloat16

    def w(k, shape):
        return (s * jax.random.normal(k, shape, jnp.float32)).astype(bf)

    return {
        # VAE encoder: Conv2d(3, LAT_C, kernel=PATCH, stride=PATCH) as a matmul
        "w_vae": w(ks[0], (3 * PATCH * PATCH, LAT_C)),
        "b_vae": jnp.zeros((1, LAT_C), jnp.float32),
        # timestep MLP
        "w_t": w(ks[1], (HID_C, HID_C)),
        "b_t": jnp.zeros((1, HID_C), jnp.float32),
        # UNet conv_in (1x1), cross-attn projections, conv_out (1x1)
        "w_in": w(ks[2], (LAT_C, HID_C)),
        "b_in": jnp.zeros((1, HID_C), jnp.float32),
        "w_q": w(ks[3], (HID_C, HID_C)),
        "w_k": w(ks[4], (CTX_D, HID_C)),
        "w_v": w(ks[5], (CTX_D, HID_C)),
        "w_o": w(ks[6], (HID_C, HID_C)),
        "w_out": w(ks[7], (HID_C, LAT_C)),
        "b_out": jnp.zeros((1, LAT_C), jnp.float32),
    }


def ddpm_alphas_cumprod():
    # diffusers "scaled_linear" schedule (SD default)
    betas = jnp.linspace(0.00085 ** 0.5, 0.012 ** 0.5,
                         NUM_TRAIN_TIMESTEPS, dtype=jnp.float32) ** 2
    return jnp.cumprod(1.0 - betas)


def timestep_embedding(t, dim):
    half = dim // 2
    freqs = jnp.exp(-math.log(10000.0) * jnp.arange(half, dtype=jnp.float32) / half)
    args = t.astype(jnp.float32)[:, None] * freqs[None, :]
    return jnp.concatenate([jnp.sin(args), jnp.cos(args)], axis=-1)   # [B, dim]


# ----------------------------------------------------------------------------
# Fused kernel: VAE encode -> add_noise -> mini UNet (one batch elem / step)
# ----------------------------------------------------------------------------
def _fused_sd_kernel(scal_ref,                                  # SMEM [B, 2]
                     img_ref, noise_ref, temb_ref, ctx_ref,     # per-batch blocks
                     w_vae_ref, b_vae_ref, w_t_ref, b_t_ref,
                     w_in_ref, b_in_ref, w_q_ref, w_k_ref, w_v_ref,
                     w_o_ref, w_out_ref, b_out_ref,
                     o_ref, *, attn_scale):
    b = pl.program_id(0)
    sa = scal_ref[b, 0]            # sqrt(alpha_cumprod_t)
    sb = scal_ref[b, 1]            # sqrt(1 - alpha_cumprod_t)

    bf16 = jnp.bfloat16
    f32 = jnp.float32

    # --- VAE encoder: patch-conv as matmul, * 0.18215 ---
    # TODO(synk): real VAE returns a latent distribution; .sample() noise
    # omitted (distribution mode used).
    patches = img_ref[...][0].astype(bf16)                      # [hw, 3*P*P]
    lat = jnp.dot(patches, w_vae_ref[...], preferred_element_type=f32)
    lat = (lat + b_vae_ref[...]) * VAE_SCALE                    # [hw, LAT_C]

    # --- DDPM scheduler.add_noise (forward diffusion) ---
    noisy = sa * lat + sb * noise_ref[...][0]                   # [hw, LAT_C]

    # --- timestep embedding MLP ---
    temb = jnp.dot(temb_ref[...][0].astype(bf16), w_t_ref[...],
                   preferred_element_type=f32)                  # [1, HID_C]
    temb = jax.nn.silu(temb + b_t_ref[...])

    # --- UNet conv_in (1x1) + temb add + silu ---
    x = jnp.dot(noisy.astype(bf16), w_in_ref[...],
                preferred_element_type=f32)                     # [hw, HID_C]
    x = jax.nn.silu(x + b_in_ref[...] + temb)

    # --- cross-attention against the text embedding ---
    q = jnp.dot(x.astype(bf16), w_q_ref[...], preferred_element_type=f32)
    ctx = ctx_ref[...][0].astype(bf16)                          # [seq, CTX_D]
    k = jnp.dot(ctx, w_k_ref[...], preferred_element_type=f32)  # [seq, HID_C]
    v = jnp.dot(ctx, w_v_ref[...], preferred_element_type=f32)  # [seq, HID_C]
    # contract last dims of q/k (no in-kernel transpose)
    s = jax.lax.dot_general(q.astype(bf16), k.astype(bf16),
                            (((1,), (1,)), ((), ())),
                            preferred_element_type=f32) * attn_scale   # [hw, seq]
    s = s - jnp.max(s, axis=-1, keepdims=True)
    p = jnp.exp(s)
    p = p * pl.reciprocal(jnp.sum(p, axis=-1, keepdims=True), approx=True)
    attn = jnp.dot(p.astype(bf16), v.astype(bf16),
                   preferred_element_type=f32)                  # [hw, HID_C]
    x = x + jnp.dot(attn.astype(bf16), w_o_ref[...], preferred_element_type=f32)

    # --- conv_out (1x1) -> predicted noise ---
    pred = jnp.dot(jax.nn.silu(x).astype(bf16), w_out_ref[...],
                   preferred_element_type=f32) + b_out_ref[...]  # [hw, LAT_C]
    o_ref[...] = pred[None].astype(o_ref.dtype)


def fused_sd_step(params, scal, patches, noise_rows, temb, ctx):
    """One fused pallas_call: VAE encode + add_noise + mini-UNet, per batch."""
    B, hw, PD = patches.shape
    seq = ctx.shape[1]
    attn_scale = 1.0 / math.sqrt(HID_C)   # single-head attention

    def full_spec(arr):
        # whole weight resident in VMEM; constant block across the grid
        return pl.BlockSpec(arr.shape, lambda b, _nd=arr.ndim: (0,) * _nd)

    weights = (params["w_vae"], params["b_vae"], params["w_t"], params["b_t"],
               params["w_in"], params["b_in"], params["w_q"], params["w_k"],
               params["w_v"], params["w_o"], params["w_out"], params["b_out"])

    return pl.pallas_call(
        functools.partial(_fused_sd_kernel, attn_scale=attn_scale),
        out_shape=jax.ShapeDtypeStruct((B, hw, LAT_C), jnp.float32),
        grid=(B,),
        in_specs=[
            pl.BlockSpec(memory_space=pltpu.MemorySpace.SMEM),       # scal [B,2]
            pl.BlockSpec((1, hw, PD), lambda b: (b, 0, 0)),          # image patches
            pl.BlockSpec((1, hw, LAT_C), lambda b: (b, 0, 0)),       # noise rows
            pl.BlockSpec((1, 1, HID_C), lambda b: (b, 0, 0)),        # temb sin/cos
            pl.BlockSpec((1, seq, CTX_D), lambda b: (b, 0, 0)),      # text embedding
        ] + [full_spec(w) for w in weights],
        out_specs=pl.BlockSpec((1, hw, LAT_C), lambda b: (b, 0, 0)),
        compiler_params=pltpu.CompilerParams(
            dimension_semantics=("parallel",)),                      # 2 TCs on v7x
    )(scal, patches, noise_rows, temb, ctx, *weights)


# ----------------------------------------------------------------------------
# Forward pass (mirrors StableDiffusion.forward): returns (noise_pred, noise)
# ----------------------------------------------------------------------------
def stable_diffusion_forward(params, I0, masked_embedding, rng):
    """I0: [B, 3, H, W] NCHW.  Returns NCHW latent-shaped (noise_pred, noise)."""
    # TODO(synk): full SD UNet (GroupNorm/ResBlocks/multi-head attention and
    # the down/up path) is not reproduced; a single cross-attention block with
    # synthetic weights stands in for the pretrained UNet.
    B, C, H, W = I0.shape
    h, w = H // PATCH, W // PATCH
    hw = h * w
    k_t, k_n = jax.random.split(rng)

    timesteps = jax.random.randint(k_t, (B,), 0, NUM_TRAIN_TIMESTEPS)
    noise_nchw = jax.random.normal(k_n, (B, LAT_C, h, w), jnp.float32)

    ac = ddpm_alphas_cumprod()[timesteps]                        # [B]
    scal = jnp.stack([jnp.sqrt(ac), jnp.sqrt(1.0 - ac)], axis=-1)  # [B, 2]

    # NCHW -> patches [B, hw, 3*PATCH*PATCH] (channels-last rows for the kernel)
    x = I0.reshape(B, C, h, PATCH, w, PATCH)
    patches = jnp.transpose(x, (0, 2, 4, 1, 3, 5)).reshape(B, hw, C * PATCH * PATCH)

    # noise in the same channels-last row layout
    noise_rows = jnp.transpose(noise_nchw, (0, 2, 3, 1)).reshape(B, hw, LAT_C)

    # sinusoidal timestep features (tiny; MLP runs inside the kernel)
    temb = timestep_embedding(timesteps, HID_C).reshape(B, 1, HID_C)

    pred_rows = fused_sd_step(params, scal, patches, noise_rows, temb,
                              masked_embedding)                  # [B, hw, LAT_C]
    noise_pred = jnp.transpose(pred_rows.reshape(B, h, w, LAT_C), (0, 3, 1, 2))
    return noise_pred, noise_nchw


if __name__ == "__main__":
    B, H, W = 2, 16, 16
    SEQ = 8

    key = jax.random.PRNGKey(0)
    k_img, k_emb, k_fwd = jax.random.split(key, 3)
    I0 = jax.random.normal(k_img, (B, 3, H, W), jnp.float32)         # NCHW, like PyTorch
    masked_embedding = jax.random.normal(k_emb, (B, SEQ, CTX_D), jnp.float32)

    params = init_params(jax.random.PRNGKey(42))

    noise_pred, noise = jax.jit(stable_diffusion_forward)(params, I0, masked_embedding, k_fwd)
    jax.block_until_ready((noise_pred, noise))

    assert noise_pred.shape == (B, LAT_C, H // PATCH, W // PATCH)
    assert noise.shape == noise_pred.shape
    assert jnp.all(jnp.isfinite(noise_pred)) and jnp.all(jnp.isfinite(noise))
    print("KERNEL_OK")
</pallas_src>

<mosaic_0001>
module attributes {stable_mosaic.version = 11 : i64} {
  func.func @_fused_sd_kernel(%arg0: i32, %arg1: memref<2x2xf32, #tpu.memory_space<smem>>, %arg2: memref<1x16x48xf32, #tpu.memory_space<vmem>>, %arg3: memref<1x16x4xf32, #tpu.memory_space<vmem>>, %arg4: memref<1x1x32xf32, #tpu.memory_space<vmem>>, %arg5: memref<1x8x32xf32, #tpu.memory_space<vmem>>, %arg6: memref<48x4xbf16, #tpu.memory_space<vmem>>, %arg7: memref<1x4xf32, #tpu.memory_space<vmem>>, %arg8: memref<32x32xbf16, #tpu.memory_space<vmem>>, %arg9: memref<1x32xf32, #tpu.memory_space<vmem>>, %arg10: memref<4x32xbf16, #tpu.memory_space<vmem>>, %arg11: memref<1x32xf32, #tpu.memory_space<vmem>>, %arg12: memref<32x32xbf16, #tpu.memory_space<vmem>>, %arg13: memref<32x32xbf16, #tpu.memory_space<vmem>>, %arg14: memref<32x32xbf16, #tpu.memory_space<vmem>>, %arg15: memref<32x32xbf16, #tpu.memory_space<vmem>>, %arg16: memref<32x4xbf16, #tpu.memory_space<vmem>>, %arg17: memref<1x4xf32, #tpu.memory_space<vmem>>, %arg18: memref<1x16x4xf32, #tpu.memory_space<vmem>>) attributes {dimension_semantics = [#tpu.dimension_semantics<parallel>], iteration_bounds = array<i64: 2>, scalar_prefetch = 0 : i64, scratch_operands = 0 : i64, tpu.core_type = #tpu.core_type<tc>, window_params = [{transform_indices = @transform_0, window_bounds = array<i64: 2, 2>}, {transform_indices = @transform_1, window_bounds = array<i64: 1, 16, 48>}, {transform_indices = @transform_2, window_bounds = array<i64: 1, 16, 4>}, {transform_indices = @transform_3, window_bounds = array<i64: 1, 1, 32>}, {transform_indices = @transform_4, window_bounds = array<i64: 1, 8, 32>}, {pipeline_mode = #tpu.pipeline_mode<synchronous>, transform_indices = @transform_5, window_bounds = array<i64: 48, 4>}, {pipeline_mode = #tpu.pipeline_mode<synchronous>, transform_indices = @transform_6, window_bounds = array<i64: 1, 4>}, {pipeline_mode = #tpu.pipeline_mode<synchronous>, transform_indices = @transform_7, window_bounds = array<i64: 32, 32>}, {pipeline_mode = #tpu.pipeline_mode<synchronous>, transform_indices = @transform_8, window_bounds = array<i64: 1, 32>}, {pipeline_mode = #tpu.pipeline_mode<synchronous>, transform_indices = @transform_9, window_bounds = array<i64: 4, 32>}, {pipeline_mode = #tpu.pipeline_mode<synchronous>, transform_indices = @transform_10, window_bounds = array<i64: 1, 32>}, {pipeline_mode = #tpu.pipeline_mode<synchronous>, transform_indices = @transform_11, window_bounds = array<i64: 32, 32>}, {pipeline_mode = #tpu.pipeline_mode<synchronous>, transform_indices = @transform_12, window_bounds = array<i64: 32, 32>}, {pipeline_mode = #tpu.pipeline_mode<synchronous>, transform_indices = @transform_13, window_bounds = array<i64: 32, 32>}, {pipeline_mode = #tpu.pipeline_mode<synchronous>, transform_indices = @transform_14, window_bounds = array<i64: 32, 32>}, {pipeline_mode = #tpu.pipeline_mode<synchronous>, transform_indices = @transform_15, window_bounds = array<i64: 32, 4>}, {pipeline_mode = #tpu.pipeline_mode<synchronous>, transform_indices = @transform_16, window_bounds = array<i64: 1, 4>}, {transform_indices = @transform_17, window_bounds = array<i64: 1, 16, 4>}]} {
    %0 = arith.index_cast %arg0 : i32 to index
    %c0 = arith.constant 0 : index
    %1 = memref.load %arg1[%0, %c0] : memref<2x2xf32, #tpu.memory_space<smem>>
    %2 = arith.index_cast %arg0 : i32 to index
    %c1 = arith.constant 1 : index
    %3 = memref.load %arg1[%2, %c1] : memref<2x2xf32, #tpu.memory_space<smem>>
    %c0_0 = arith.constant 0 : index
    %c0_1 = arith.constant 0 : index
    %c0_2 = arith.constant 0 : index
    %4 = vector.load %arg2[%c0_0, %c0_1, %c0_2] : memref<1x16x48xf32, #tpu.memory_space<vmem>>, vector<1x16x48xf32>
    %5 = vector.shape_cast %4 : vector<1x16x48xf32> to vector<16x48xf32>
    %6 = arith.truncf %5 : vector<16x48xf32> to vector<16x48xbf16>
    %c0_3 = arith.constant 0 : index
    %c0_4 = arith.constant 0 : index
    %7 = vector.load %arg6[%c0_3, %c0_4] : memref<48x4xbf16, #tpu.memory_space<vmem>>, vector<48x4xbf16>
    %cst = arith.constant dense<0.000000e+00> : vector<16x4xf32>
    %8 = tpu.matmul %6, %7, %cst {dimension_numbers = #tpu.dot_dimension_numbers<[1], [0], [0], [1], [0, 0, 1, 1], [], []>} : vector<16x48xbf16>, vector<48x4xbf16>, vector<16x4xf32> -> vector<16x4xf32>
    %c0_5 = arith.constant 0 : index
    %c0_6 = arith.constant 0 : index
    %9 = vector.load %arg7[%c0_5, %c0_6] : memref<1x4xf32, #tpu.memory_space<vmem>>, vector<1x4xf32>
    %10 = vector.broadcast %9 : vector<1x4xf32> to vector<16x4xf32>
    %11 = arith.addf %8, %10 : vector<16x4xf32>
    %cst_7 = arith.constant 1.821500e-01 : f32
    %12 = vector.broadcast %cst_7 : f32 to vector<16x4xf32>
    %13 = arith.mulf %11, %12 : vector<16x4xf32>
    %14 = vector.broadcast %1 : f32 to vector<16x4xf32>
    %15 = arith.mulf %14, %13 : vector<16x4xf32>
    %c0_8 = arith.constant 0 : index
    %c0_9 = arith.constant 0 : index
    %c0_10 = arith.constant 0 : index
    %16 = vector.load %arg3[%c0_8, %c0_9, %c0_10] : memref<1x16x4xf32, #tpu.memory_space<vmem>>, vector<1x16x4xf32>
    %17 = vector.shape_cast %16 : vector<1x16x4xf32> to vector<16x4xf32>
    %18 = vector.broadcast %3 : f32 to vector<16x4xf32>
    %19 = arith.mulf %18, %17 : vector<16x4xf32>
    %20 = arith.addf %15, %19 : vector<16x4xf32>
    %c0_11 = arith.constant 0 : index
    %c0_12 = arith.constant 0 : index
    %c0_13 = arith.constant 0 : index
    %21 = vector.load %arg4[%c0_11, %c0_12, %c0_13] : memref<1x1x32xf32, #tpu.memory_space<vmem>>, vector<1x1x32xf32>
    %22 = vector.shape_cast %21 : vector<1x1x32xf32> to vector<1x32xf32>
    %23 = arith.truncf %22 : vector<1x32xf32> to vector<1x32xbf16>
    %c0_14 = arith.constant 0 : index
    %c0_15 = arith.constant 0 : index
    %24 = vector.load %arg8[%c0_14, %c0_15] : memref<32x32xbf16, #tpu.memory_space<vmem>>, vector<32x32xbf16>
    %cst_16 = arith.constant dense<0.000000e+00> : vector<1x32xf32>
    %25 = tpu.matmul %23, %24, %cst_16 {dimension_numbers = #tpu.dot_dimension_numbers<[1], [0], [0], [1], [0, 0, 1, 1], [], []>} : vector<1x32xbf16>, vector<32x32xbf16>, vector<1x32xf32> -> vector<1x32xf32>
    %c0_17 = arith.constant 0 : index
    %c0_18 = arith.constant 0 : index
    %26 = vector.load %arg9[%c0_17, %c0_18] : memref<1x32xf32, #tpu.memory_space<vmem>>, vector<1x32xf32>
    %27 = arith.addf %25, %26 : vector<1x32xf32>
    %28 = arith.negf %27 : vector<1x32xf32>
    %29 = math.exp %28 : vector<1x32xf32>
    %cst_19 = arith.constant 1.000000e+00 : f32
    %30 = vector.broadcast %cst_19 : f32 to vector<1x32xf32>
    %31 = arith.addf %30, %29 : vector<1x32xf32>
    %32 = arith.divf %30, %31 : vector<1x32xf32>
    %33 = arith.mulf %27, %32 : vector<1x32xf32>
    %34 = arith.truncf %20 : vector<16x4xf32> to vector<16x4xbf16>
    %c0_20 = arith.constant 0 : index
    %c0_21 = arith.constant 0 : index
    %35 = vector.load %arg10[%c0_20, %c0_21] : memref<4x32xbf16, #tpu.memory_space<vmem>>, vector<4x32xbf16>
    %cst_22 = arith.constant dense<0.000000e+00> : vector<16x32xf32>
    %36 = tpu.matmul %34, %35, %cst_22 {dimension_numbers = #tpu.dot_dimension_numbers<[1], [0], [0], [1], [0, 0, 1, 1], [], []>} : vector<16x4xbf16>, vector<4x32xbf16>, vector<16x32xf32> -> vector<16x32xf32>
    %c0_23 = arith.constant 0 : index
    %c0_24 = arith.constant 0 : index
    %37 = vector.load %arg11[%c0_23, %c0_24] : memref<1x32xf32, #tpu.memory_space<vmem>>, vector<1x32xf32>
    %38 = vector.broadcast %37 : vector<1x32xf32> to vector<16x32xf32>
    %39 = arith.addf %36, %38 : vector<16x32xf32>
    %40 = vector.broadcast %33 : vector<1x32xf32> to vector<16x32xf32>
    %41 = arith.addf %39, %40 : vector<16x32xf32>
    %42 = arith.negf %41 : vector<16x32xf32>
    %43 = math.exp %42 : vector<16x32xf32>
    %cst_25 = arith.constant 1.000000e+00 : f32
    %44 = vector.broadcast %cst_25 : f32 to vector<16x32xf32>
    %45 = arith.addf %44, %43 : vector<16x32xf32>
    %46 = arith.divf %44, %45 : vector<16x32xf32>
    %47 = arith.mulf %41, %46 : vector<16x32xf32>
    %48 = arith.truncf %47 : vector<16x32xf32> to vector<16x32xbf16>
    %c0_26 = arith.constant 0 : index
    %c0_27 = arith.constant 0 : index
    %49 = vector.load %arg12[%c0_26, %c0_27] : memref<32x32xbf16, #tpu.memory_space<vmem>>, vector<32x32xbf16>
    %cst_28 = arith.constant dense<0.000000e+00> : vector<16x32xf32>
    %50 = tpu.matmul %48, %49, %cst_28 {dimension_numbers = #tpu.dot_dimension_numbers<[1], [0], [0], [1], [0, 0, 1, 1], [], []>} : vector<16x32xbf16>, vector<32x32xbf16>, vector<16x32xf32> -> vector<16x32xf32>
    %c0_29 = arith.constant 0 : index
    %c0_30 = arith.constant 0 : index
    %c0_31 = arith.constant 0 : index
    %51 = vector.load %arg5[%c0_29, %c0_30, %c0_31] : memref<1x8x32xf32, #tpu.memory_space<vmem>>, vector<1x8x32xf32>
    %52 = vector.shape_cast %51 : vector<1x8x32xf32> to vector<8x32xf32>
    %53 = arith.truncf %52 : vector<8x32xf32> to vector<8x32xbf16>
    %c0_32 = arith.constant 0 : index
    %c0_33 = arith.constant 0 : index
    %54 = vector.load %arg13[%c0_32, %c0_33] : memref<32x32xbf16, #tpu.memory_space<vmem>>, vector<32x32xbf16>
    %cst_34 = arith.constant dense<0.000000e+00> : vector<8x32xf32>
    %55 = tpu.matmul %53, %54, %cst_34 {dimension_numbers = #tpu.dot_dimension_numbers<[1], [0], [0], [1], [0, 0, 1, 1], [], []>} : vector<8x32xbf16>, vector<32x32xbf16>, vector<8x32xf32> -> vector<8x32xf32>
    %c0_35 = arith.constant 0 : index
    %c0_36 = arith.constant 0 : index
    %56 = vector.load %arg14[%c0_35, %c0_36] : memref<32x32xbf16, #tpu.memory_space<vmem>>, vector<32x32xbf16>
    %cst_37 = arith.constant dense<0.000000e+00> : vector<8x32xf32>
    %57 = tpu.matmul %53, %56, %cst_37 {dimension_numbers = #tpu.dot_dimension_numbers<[1], [0], [0], [1], [0, 0, 1, 1], [], []>} : vector<8x32xbf16>, vector<32x32xbf16>, vector<8x32xf32> -> vector<8x32xf32>
    %58 = arith.truncf %50 : vector<16x32xf32> to vector<16x32xbf16>
    %59 = arith.truncf %55 : vector<8x32xf32> to vector<8x32xbf16>
    %cst_38 = arith.constant dense<0.000000e+00> : vector<16x8xf32>
    %60 = tpu.matmul %58, %59, %cst_38 {dimension_numbers = #tpu.dot_dimension_numbers<[1], [1], [0], [0], [0, 0, 1, 0], [], []>} : vector<16x32xbf16>, vector<8x32xbf16>, vector<16x8xf32> -> vector<16x8xf32>
    %cst_39 = arith.constant 0.176776692 : f32
    %61 = vector.broadcast %cst_39 : f32 to vector<16x8xf32>
    %62 = arith.mulf %60, %61 : vector<16x8xf32>
    %cst_40 = arith.constant dense<0xFF800000> : vector<16xf32>
    %63 = vector.multi_reduction <maximumf>, %62, %cst_40 [1] : vector<16x8xf32> to vector<16xf32>
    %64 = vector.shape_cast %63 : vector<16xf32> to vector<16x1xf32>
    %65 = vector.broadcast %64 : vector<16x1xf32> to vector<16x8xf32>
    %66 = arith.subf %62, %65 : vector<16x8xf32>
    %67 = math.exp %66 : vector<16x8xf32>
    %cst_41 = arith.constant dense<0.000000e+00> : vector<16xf32>
    %68 = vector.multi_reduction <add>, %67, %cst_41 [1] : vector<16x8xf32> to vector<16xf32>
    %69 = vector.shape_cast %68 : vector<16xf32> to vector<16x1xf32>
    %70 = tpu.reciprocal %69 {approx = true} : vector<16x1xf32> -> vector<16x1xf32>
    %71 = vector.broadcast %70 : vector<16x1xf32> to vector<16x8xf32>
    %72 = arith.mulf %67, %71 : vector<16x8xf32>
    %73 = arith.truncf %72 : vector<16x8xf32> to vector<16x8xbf16>
    %74 = arith.truncf %57 : vector<8x32xf32> to vector<8x32xbf16>
    %cst_42 = arith.constant dense<0.000000e+00> : vector<16x32xf32>
    %75 = tpu.matmul %73, %74, %cst_42 {dimension_numbers = #tpu.dot_dimension_numbers<[1], [0], [0], [1], [0, 0, 1, 1], [], []>} : vector<16x8xbf16>, vector<8x32xbf16>, vector<16x32xf32> -> vector<16x32xf32>
    %76 = arith.truncf %75 : vector<16x32xf32> to vector<16x32xbf16>
    %c0_43 = arith.constant 0 : index
    %c0_44 = arith.constant 0 : index
    %77 = vector.load %arg15[%c0_43, %c0_44] : memref<32x32xbf16, #tpu.memory_space<vmem>>, vector<32x32xbf16>
    %cst_45 = arith.constant dense<0.000000e+00> : vector<16x32xf32>
    %78 = tpu.matmul %76, %77, %cst_45 {dimension_numbers = #tpu.dot_dimension_numbers<[1], [0], [0], [1], [0, 0, 1, 1], [], []>} : vector<16x32xbf16>, vector<32x32xbf16>, vector<16x32xf32> -> vector<16x32xf32>
    %79 = arith.addf %47, %78 : vector<16x32xf32>
    %80 = arith.negf %79 : vector<16x32xf32>
    %81 = math.exp %80 : vector<16x32xf32>
    %cst_46 = arith.constant 1.000000e+00 : f32
    %82 = vector.broadcast %cst_46 : f32 to vector<16x32xf32>
    %83 = arith.addf %82, %81 : vector<16x32xf32>
    %84 = arith.divf %82, %83 : vector<16x32xf32>
    %85 = arith.mulf %79, %84 : vector<16x32xf32>
    %86 = arith.truncf %85 : vector<16x32xf32> to vector<16x32xbf16>
    %c0_47 = arith.constant 0 : index
    %c0_48 = arith.constant 0 : index
    %87 = vector.load %arg16[%c0_47, %c0_48] : memref<32x4xbf16, #tpu.memory_space<vmem>>, vector<32x4xbf16>
    %cst_49 = arith.constant dense<0.000000e+00> : vector<16x4xf32>
    %88 = tpu.matmul %86, %87, %cst_49 {dimension_numbers = #tpu.dot_dimension_numbers<[1], [0], [0], [1], [0, 0, 1, 1], [], []>} : vector<16x32xbf16>, vector<32x4xbf16>, vector<16x4xf32> -> vector<16x4xf32>
    %c0_50 = arith.constant 0 : index
    %c0_51 = arith.constant 0 : index
    %89 = vector.load %arg17[%c0_50, %c0_51] : memref<1x4xf32, #tpu.memory_space<vmem>>, vector<1x4xf32>
    %90 = vector.broadcast %89 : vector<1x4xf32> to vector<16x4xf32>
    %91 = arith.addf %88, %90 : vector<16x4xf32>
    %92 = vector.shape_cast %91 : vector<16x4xf32> to vector<1x16x4xf32>
    %c0_52 = arith.constant 0 : index
    %c0_53 = arith.constant 0 : index
    %c0_54 = arith.constant 0 : index
    %93 = vector.load %arg18[%c0_52, %c0_53, %c0_54] : memref<1x16x4xf32, #tpu.memory_space<vmem>>, vector<1x16x4xf32>
    tpu.vector_store %arg18[%c0_52, %c0_53, %c0_54], %92 {strides = array<i32>} : memref<1x16x4xf32, #tpu.memory_space<vmem>>, vector<1x16x4xf32>,
    return
  }
  func.func @transform_0(%arg0: i32) -> (i32, i32) {
    %c0_i32 = arith.constant 0 : i32
    %c0_i32_0 = arith.constant 0 : i32
    %c0_i32_1 = arith.constant 0 : i32
    return %c0_i32, %c0_i32_0 : i32, i32
  }
  func.func @transform_1(%arg0: i32) -> (i32, i32, i32) {
    %c0_i32 = arith.constant 0 : i32
    %c0_i32_0 = arith.constant 0 : i32
    %c0_i32_1 = arith.constant 0 : i32
    return %arg0, %c0_i32, %c0_i32_0 : i32, i32, i32
  }
  func.func @transform_2(%arg0: i32) -> (i32, i32, i32) {
    %c0_i32 = arith.constant 0 : i32
    %c0_i32_0 = arith.constant 0 : i32
    %c0_i32_1 = arith.constant 0 : i32
    return %arg0, %c0_i32, %c0_i32_0 : i32, i32, i32
  }
  func.func @transform_3(%arg0: i32) -> (i32, i32, i32) {
    %c0_i32 = arith.constant 0 : i32
    %c0_i32_0 = arith.constant 0 : i32
    %c0_i32_1 = arith.constant 0 : i32
    return %arg0, %c0_i32, %c0_i32_0 : i32, i32, i32
  }
  func.func @transform_4(%arg0: i32) -> (i32, i32, i32) {
    %c0_i32 = arith.constant 0 : i32
    %c0_i32_0 = arith.constant 0 : i32
    %c0_i32_1 = arith.constant 0 : i32
    return %arg0, %c0_i32, %c0_i32_0 : i32, i32, i32
  }
  func.func @transform_5(%arg0: i32) -> (i32, i32) {
    %c0_i32 = arith.constant 0 : i32
    %c0_i32_0 = arith.constant 0 : i32
    %c0_i32_1 = arith.constant 0 : i32
    return %c0_i32, %c0_i32_0 : i32, i32
  }
  func.func @transform_6(%arg0: i32) -> (i32, i32) {
    %c0_i32 = arith.constant 0 : i32
    %c0_i32_0 = arith.constant 0 : i32
    %c0_i32_1 = arith.constant 0 : i32
    return %c0_i32, %c0_i32_0 : i32, i32
  }
  func.func @transform_7(%arg0: i32) -> (i32, i32) {
    %c0_i32 = arith.constant 0 : i32
    %c0_i32_0 = arith.constant 0 : i32
    %c0_i32_1 = arith.constant 0 : i32
    return %c0_i32, %c0_i32_0 : i32, i32
  }
  func.func @transform_8(%arg0: i32) -> (i32, i32) {
    %c0_i32 = arith.constant 0 : i32
    %c0_i32_0 = arith.constant 0 : i32
    %c0_i32_1 = arith.constant 0 : i32
    return %c0_i32, %c0_i32_0 : i32, i32
  }
  func.func @transform_9(%arg0: i32) -> (i32, i32) {
    %c0_i32 = arith.constant 0 : i32
    %c0_i32_0 = arith.constant 0 : i32
    %c0_i32_1 = arith.constant 0 : i32
    return %c0_i32, %c0_i32_0 : i32, i32
  }
  func.func @transform_10(%arg0: i32) -> (i32, i32) {
    %c0_i32 = arith.constant 0 : i32
    %c0_i32_0 = arith.constant 0 : i32
    %c0_i32_1 = arith.constant 0 : i32
    return %c0_i32, %c0_i32_0 : i32, i32
  }
  func.func @transform_11(%arg0: i32) -> (i32, i32) {
    %c0_i32 = arith.constant 0 : i32
    %c0_i32_0 = arith.constant 0 : i32
    %c0_i32_1 = arith.constant 0 : i32
    return %c0_i32, %c0_i32_0 : i32, i32
  }
  func.func @transform_12(%arg0: i32) -> (i32, i32) {
    %c0_i32 = arith.constant 0 : i32
    %c0_i32_0 = arith.constant 0 : i32
    %c0_i32_1 = arith.constant 0 : i32
    return %c0_i32, %c0_i32_0 : i32, i32
  }
  func.func @transform_13(%arg0: i32) -> (i32, i32) {
    %c0_i32 = arith.constant 0 : i32
    %c0_i32_0 = arith.constant 0 : i32
    %c0_i32_1 = arith.constant 0 : i32
    return %c0_i32, %c0_i32_0 : i32, i32
  }
  func.func @transform_14(%arg0: i32) -> (i32, i32) {
    %c0_i32 = arith.constant 0 : i32
    %c0_i32_0 = arith.constant 0 : i32
    %c0_i32_1 = arith.constant 0 : i32
    return %c0_i32, %c0_i32_0 : i32, i32
  }
  func.func @transform_15(%arg0: i32) -> (i32, i32) {
    %c0_i32 = arith.constant 0 : i32
    %c0_i32_0 = arith.constant 0 : i32
    %c0_i32_1 = arith.constant 0 : i32
    return %c0_i32, %c0_i32_0 : i32, i32
  }
  func.func @transform_16(%arg0: i32) -> (i32, i32) {
    %c0_i32 = arith.constant 0 : i32
    %c0_i32_0 = arith.constant 0 : i32
    %c0_i32_1 = arith.constant 0 : i32
    return %c0_i32, %c0_i32_0 : i32, i32
  }
  func.func @transform_17(%arg0: i32) -> (i32, i32, i32) {
    %c0_i32 = arith.constant 0 : i32
    %c0_i32_0 = arith.constant 0 : i32
    %c0_i32_1 = arith.constant 0 : i32
    return %arg0, %c0_i32, %c0_i32_0 : i32, i32, i32
  }
}

</mosaic_0001>

<bundles_post_ra>
// kernel: stable_diffusion_forward.21
= control target key start
LH: loop header
LB: loop body
LE: loop exit
PB: predicated region body
PF: predicated region fallthrough
CT: control target
= control target key end

     0   :  { %s1933_s0 = inlined_call_operand.vmem [shape: f32[2,2], index: 0, kind: input, shape index: {}]   ;;  %s1934_s1 = inlined_call_operand.vmem [shape: f32[2,16,48], index: 1, kind: input, shape index: {}]   ;;  %s1935_s2 = inlined_call_operand.vmem [shape: f32[2,16,4], index: 2, kind: input, shape index: {}]   ;;  %s1936_s3 = inlined_call_operand.vmem [shape: f32[2,1,32], index: 3, kind: input, shape index: {}]   ;;  %s1937_s4 = inlined_call_operand.vmem [shape: f32[2,8,32], index: 4, kind: input, shape index: {}]   ;;  %s1938_s5 = inlined_call_operand.vmem [shape: bf16[48,4], index: 5, kind: input, shape index: {}]   ;;  %s1939_s6 = inlined_call_operand.vmem [shape: f32[1,4], index: 6, kind: input, shape index: {}]   ;;  %s1940_s7 = inlined_call_operand.vmem [shape: bf16[32,32], index: 7, kind: input, shape index: {}]   ;;  %s1941_s8 = inlined_call_operand.vmem [shape: f32[1,32], index: 8, kind: input, shape index: {}]   ;;  %s1942_s9 = inlined_call_operand.vmem [shape: bf16[4,32], index: 9, kind: input, shape index: {}]   ;;  %s1943_s10 = inlined_call_operand.vmem [shape: f32[1,32], index: 10, kind: input, shape index: {}]   ;;  %s1944_s11 = inlined_call_operand.vmem [shape: bf16[32,32], index: 11, kind: input, shape index: {}]   ;;  %s1945_s12 = inlined_call_operand.vmem [shape: bf16[32,32], index: 12, kind: input, shape index: {}]   ;;  %s1946_s13 = inlined_call_operand.vmem [shape: bf16[32,32], index: 13, kind: input, shape index: {}]   ;;  %s1947_s14 = inlined_call_operand.vmem [shape: bf16[32,32], index: 14, kind: input, shape index: {}]   ;;  %s1948_s15 = inlined_call_operand.vmem [shape: bf16[32,4], index: 15, kind: input, shape index: {}]   ;;  %s1949_s16 = inlined_call_operand.vmem [shape: f32[1,4], index: 16, kind: input, shape index: {}]   ;;  %s1950_s17 = inlined_call_operand.vmem [shape: f32[2,16,4], index: 17, kind: output, shape index: {}]  }
   0x1   :  { %1951 = sst [smem:[#allocation5_spill]] %s1933_s0 }
   0x2   :  { %1952 = sst [smem:[#allocation6_spill]] %s1934_s1 }
   0x3   :  { %22 = vsyncpa [#allocation3], 0  ;;  %s1748_s24 = smov 0  }
   0x4 LB: > { %s1754_s25 = sadd.s32 4294967295, %s1653_s24   ;;  %p1409_p0 = scmp.ge.s32.totalorder %s1653_s24, 1  ;;  %s1653_s24 = sphi %s1748_s24, %s28_s24  }
   0x5   : > { %p436_p1 = scmp.lt.s32.totalorder %s1653_s24, 3  ;;  %s1953_s28 = sld [smem:[#allocation5_spill]] }
   0x6   : > { %p1572_p3 = scmp.eq.s32.totalorder %s1754_s25, 0 }
   0x7   : > { %p1761_p2 = pnand %p1409_p0, %p436_p1 }
   0x9   : > { %p1568_p4 = pneg %p1761_p2 }
   0xb   : > { %s449_s29 = sshll.u32 %s1953_s28, 4  ;;  %p1569_p5 = pnand %p1572_p3, %p1568_p4  ;;  %s450_s29 = int_to_ptr.vmem [resolvable:$true] %s449_s29 }
   0xc   : > { %s1628_s30 = scalar_lea.vmem %s450_s29, 32  ;;  %p1636_p10 = scmp.lt.s32.totalorder %s450_s29, %s450_s29 }
   0xd   : > { %p1629_p6 = scmp.ne.s32.totalorder %s450_s29, %s1628_s30  ;;  %p1630_p7 = pneg %p1569_p5 }
   0xe   : > { %p1637_p11 = scmp.lt.s32.totalorder %s1628_s30, %s1628_s30 }
   0xf   : > { %p1631_p8 = pnand %p1630_p7, %p1629_p6 }
  0x10   : > { %p1638_p12 = por %p1637_p11, %p1636_p10 }
  0x11   : > { %p1632_p9 = pneg %p1631_p8 }
  0x13   : > { %p1639_p13 = pnand %p1638_p12, %p1632_p9 }
  0x15   : > { %1642 = shalt.err (!%p1639_p13)
}
  0x16   : > { %s1655_s18 = smov [#allocation2]   ;;  %527 = sbr.rel (%p1761_p2) target bundleno = 1833 (0x729), region = 88 }
  0x17   : > { %1571 = dma.vmem_to_smem (!%p1569_p5), %s450_s29, 32, %s1655_s18, [#allocation3]  }
  0x1b   : > { %1648 = dma.done.wait (%p1572_p3), [#allocation3], 32  }
  0x1c   : > { %1650 = vsyncadd (%p1572_p3), [#allocation3], 4294967264 }
  0x1d   : > { %533 = sfence }
  0x1e   : > { %v1585_v0 = vld [vmem:[%s1938_s5 + $0x10] sm:$0xff]   ;;  %v1656_v1 = vmov 0.0   ;;  %v1586_v2 = vld [vmem:[%s1938_s5 + $0x8] sm:$0xff]   ;;  %vm1657_vm0 = vmmov 0   ;;  %p592_p0 = scmp.lt.s32.totalorder %s1754_s25, 1  ;;  %v1589_v4 = vld [vmem:[%s1940_s7] sm:$0xff]   ;;  %v838_v48 = vlaneseq }
  0x1f   : > { %1488 = vmatprep.subr.bf16.mxu0 %v1656_v1  ;;  %1498 = vmatprep.subr.bf16.mxu1 %v1656_v1  ;;  %v1588_v3 = vld [vmem:[%s1940_s7 + $0x8] sm:$0xff]   ;;  %v1587_v5 = vld [vmem:[%s1938_s5] sm:$0xff]   ;;  %s1955_s22 = sld [smem:[#allocation6_spill]]  ;;  %vm653_vm1 = vcmask 392192   ;;  %vm729_vm2 = vcmask 261120   ;;  %vm793_vm3 = vcmask 1041408  }
  0x20   : > { %1489 = vmatpush3.bf16.msra.mxu0 %v1585_v0  ;;  %1494 = vmatprep.mubr.msk.bf16.mxu0 %vm1657_vm0, %v1656_v1  ;;  %s1794_s26 = scalar_select %p592_p0, %s1754_s25, 1  ;;  %v781_v11 = vld [vmem:[%s1942_s9] sm:$0x3]  ;;  %vm789_vm4 = vcmask 31744   ;;  %v1590_v37 = vld [vmem:[%s1945_s12 + $0x8] sm:$0xff]   ;;  %v839_v49 = vshrl.u32 %v838_v48, 7 }
  0x21   : > { %1490 = vmatprep.subr.bf16.mxu0 %v1656_v1  ;;  %1502 = vmatprep.mubr.msk.bf16.mxu1 %vm1657_vm0, %v1656_v1  ;;  %v795_v12 = vsel %vm793_vm3, %v781_v11, 0  ;;  %s1421_s29 = sshll.u32 %s1754_s25, 7  ;;  %v1422_v13 = vld [vmem:[%s1939_s6] ss:$0 sm:$0xff]  ;;  %v1592_v41 = vld [vmem:[%s1944_s11 + $0x8] sm:$0xff]   ;;  %vm1087_vm5 = vcmask 64512  }
  0x22   : > { %1499 = vmatpush3.bf16.msra.mxu1 %v1588_v3  ;;  %s1803_s30 = sshll.u32 %s1794_s26, 4  ;;  %s604_s1 = scalar_lea.vmem %s1936_s3, %s1794_s26  ;;  %v1591_v38 = vld [vmem:[%s1945_s12] sm:$0xff]   ;;  %v840_v52 = vsub.s32 0, %v839_v49  ;;  %vm1115_vm6 = vcmask 1043456   ;;  %v1596_v48 = vld [vmem:[%s1947_s14 + $0x8] sm:$0xff]  }
  0x23   : > { %1500 = vmatprep.subr.bf16.mxu1 %v1656_v1  ;;  %v710_v6 = vld [vmem:[%s604_s1] sm:$0x1]  ;;  %s617_s0 = sadd.s32 1, %s1421_s29  ;;  %s616_s18 = sld [smem:[#allocation2 + %s1421_s29]] }
  0x24   : > { %1491 = vmatpush3.bf16.msra.mxu0 %v1586_v2  ;;  %v711_v9 = vpack.c.bf16 %v710_v6, %v710_v6  ;;  %s618_s19 = sld [smem:[#allocation2 + %s617_s0]]  ;;  %s1418_s0 = sshll.u32 %s1794_s26, 3  ;;  %v1593_v42 = vld [vmem:[%s1944_s11] sm:$0xff]  }
  0x25   : > { %1492 = vmatprep.subr.bf16.mxu0 %v1656_v1  ;;  %s596_s23 = scalar_lea.vmem %s1955_s22, %s1803_s30  ;;  %s608_s1 = scalar_lea.vmem %s1937_s4, %s1418_s0  ;;  %v716_v43 = vld [vmem:[%s1941_s8] sm:$0x1] }
  0x26   : > { %v619_v7 = vld [vmem:[%s596_s23] sm:$0xff]  ;;  %v620_v8 = vld [vmem:[%s596_s23 + $0x8] sm:$0xff]  ;;  %1501 = vmatpush3.bf16.msra.mxu1 %v1589_v4  ;;  %s601_s23 = scalar_lea.vmem %s1935_s2, %s1803_s30 }
  0x27   : > { %v621_v10 = vpack.c.bf16 %v620_v8, %v619_v7  ;;  %1506 = vmatprep.subr.bf16.mxu1 %v1656_v1  ;;  %v703_v22 = vld [vmem:[%s601_s23] sm:$0xff]  ;;  %v704_v25 = vld [vmem:[%s601_s23 + $0x8] sm:$0xff] }
  0x28   : > { %1493 = vmatpush3.bf16.msra.mxu0 %v1587_v5  ;;  %v919_v39 = vld [vmem:[%s608_s1] sm:$0xff] }
  0x29   : > { %1512 = vmatprep.subr.bf16.mxu0 %v1656_v1  ;;  %1503 = vmatmul.mubr.msk.bf16.vlgmr.msra.gmra.mxu1 %vm729_vm2, %v711_v9  ;;  %v700_v21 = vstv %s616_s18  ;;  %v1848_v40 = vpack.c.bf16 %v919_v39, %v919_v39  ;;  %v1431_v53 = vld [vmem:[%s1943_s10] ss:$0 sm:$0xff] }
  0x2a   : > { %1508 = vmatprep.mubr.msk.bf16.mxu1 %vm1657_vm0, %v1656_v1  ;;  %1507 = vmatpush3.bf16.msra.mxu1 %v795_v12  ;;  %v705_v23 = vstv %s618_s19  ;;  %s613_s19 = scalar_lea.vmem %s1950_s17, %s1803_s30 }
  0x2b   : > { %1495 = vmatmul.mubr.msk.bf16.vlgmr.msra.gmra.mxu0 %vm653_vm1, %v621_v10  ;;  %1520 = vmatprep.subr.bf16.mxu1 %v1656_v1  ;;  %v706_v30 = vmul.f32 %v705_v23, %v703_v22  ;;  %v707_v32 = vmul.f32 %v705_v23, %v704_v25  ;;  %v1594_v22 = vld [vmem:[%s1946_s13 + $0x8] sm:$0xff]   ;;  %v1595_v23 = vld [vmem:[%s1946_s13] sm:$0xff]  }
  0x2c   : > { %1516 = vmatprep.mubr.msk.bf16.mxu0 %vm1657_vm0, %v1656_v1  ;;  %1513 = vmatpush3.bf16.msra.mxu0 %v1592_v41 }
  0x2d   : > { %1514 = vmatprep.subr.bf16.mxu0 %v1656_v1 }
  0x30   : > { %1515 = vmatpush3.bf16.msra.mxu0 %v1593_v42 }
  0x31   : > { %1528 = vmatprep.subr.bf16.mxu0 %v1656_v1 }
  0xe9   : > { %v767_v14 = vpop.f32.mrf.mxu1 }
  0xea   : > { %v768_v44 = vadd.f32 %v767_v14, %v716_v43 }
  0xeb   : > { %v691_v15 = vpop.f32.mrf.mxu0  ;;  %v1504_v17 = vpop.f32.mrf.mxu1 }
  0xec   : > { %v692_v16 = vadd.f32 %v1422_v13, %v691_v15  ;;  %v1430_v45 = vmul.f32 -1.442695, %v768_v44 }
  0xed   : > { %v1496_v18 = vpop.f32.mrf.mxu0  ;;  %v770_v20 = vpop.f32.mrf.mxu1 }
  0xee   : > { %v698_v19 = vmul.f32 0.18215, %v692_v16  ;;  %1600 = vpow2.f32 %v1430_v45 }
  0xef   : > { %v694_v24 = vpop.f32.mrf.mxu0  ;;  %v1505_v27 = vpop.f32.mrf.mxu1 }
  0xf0   : > { %v695_v26 = vadd.f32 %v1422_v13, %v694_v24  ;;  %v701_v29 = vmul.f32 %v700_v21, %v698_v19 }
  0xf1   : > { %v1497_v28 = vpop.f32.mrf.mxu0 }
  0xf2   : > { %v699_v31 = vmul.f32 0.18215, %v695_v26  ;;  %v708_v34 = vadd.f32 %v706_v30, %v701_v29 }
  0xf4   : > { %v702_v33 = vmul.f32 %v700_v21, %v699_v31 }
  0xf6   : > { %v709_v35 = vadd.f32 %v707_v32, %v702_v33 }
  0xf8   : > { %v780_v36 = vpack.c.bf16 %v709_v35, %v708_v34 }
  0xfa   : > { %1509 = vmatmul.mubr.msk.bf16.vlgmr.msra.gmra.mxu1 %vm789_vm4, %v780_v36 }
  0xfb   : > { %1524 = vmatprep.mubr.msk.bf16.mxu1 %vm1657_vm0, %v1656_v1  ;;  %1521 = vmatpush3.bf16.msra.mxu1 %v1590_v37  ;;  %v1601_v46 = vpop.eup %1600 }
  0xfc   : > { %1522 = vmatprep.subr.bf16.mxu1 %v1656_v1  ;;  %v776_v47 = vadd.f32 1.0, %v1601_v46 }
  0xfe   : > { %1602 = vrcp.f32 %v776_v47 }
  0xff   : > { %1523 = vmatpush3.bf16.msra.mxu1 %v1591_v38 }
 0x100   : > { %1536 = vmatprep.subr.bf16.mxu1 %v1656_v1 }
 0x102   : > { %1525 = vmatmul.mubr.msk.bf16.vlgmr.msra.gmra.mxu1 %vm729_vm2, %v1848_v40 }
 0x103   : > { %1538 = vmatprep.mubr.msk.bf16.mxu1 %vm1657_vm0, %v1656_v1 }
 0x10b   : > { %v1603_v50 = vpop.eup %1602 }
 0x10c   : > { %v779_v51 = vmul.f32 %v1603_v50, %v768_v44 }
 0x10e   : > { %v841_v56 = vrot.slane %v779_v51, %v840_v52 }
 0x1ba   : > { %v831_v54 = vpop.f32.mrf.mxu1 }
 0x1bb   : > { %v832_v55 = vadd.f32 %v1431_v53, %v831_v54 }
 0x1bc   : > { %v1510_v57 = vpop.f32.mrf.mxu1 }
 0x1bd   : > { %v842_v58 = vadd.f32 %v841_v56, %v832_v55 }
 0x1be   : > { %v834_v59 = vpop.f32.mrf.mxu1 }
 0x1bf   : > { %v1433_v60 = vmul.f32 -1.442695, %v842_v58  ;;  %v835_v61 = vadd.f32 %v1431_v53, %v834_v59 }
 0x1c0   : > { %v1511_v62 = vpop.f32.mrf.mxu1 }
 0x1c1   : > { %1604 = vpow2.f32 %v1433_v60  ;;  %v843_v63 = vadd.f32 %v841_v56, %v835_v61  ;;  %v1597_v56 = vld [vmem:[%s1947_s14] sm:$0xff]   ;;  %v1598_v62 = vld [vmem:[%s1948_s15 + $0x8] sm:$0xff]  }
 0x1c2   : > { %v974_v11 = vpop.f32.mrf.mxu1 }
 0x1c3   : > { %v1434_v0 = vmul.f32 -1.442695, %v843_v63  ;;  %v1037_v12 = vpack.c.bf16 %v974_v11, %v974_v11 }
 0x1c4   : > { %v1526_v13 = vpop.f32.mrf.mxu1 }
 0x1c5   : > { %1606 = vpow2.f32 %v1434_v0  ;;  %v1042_v14 = vsel %vm729_vm2, %v1037_v12, 0 }
 0x1c6   : > { %v977_v15 = vpop.f32.mrf.mxu1  ;;  %1537 = vmatpush3.bf16.xpose.msra.mxu1 %v1042_v14 }
 0x1c7   : > { %1548 = vmatprep.subr.bf16.mxu1 %v1656_v1 }
 0x1c8   : > { %v1527_v16 = vpop.f32.mrf.mxu1 }
 0x1ce   : > { %v1605_v2 = vpop.eup %1604 }
 0x1cf   : > { %v850_v3 = vadd.f32 1.0, %v1605_v2 }
 0x1d1   : > { %1608 = vrcp.f32 %v850_v3 }
 0x1d2   : > { %v1607_v4 = vpop.eup %1606 }
 0x1d3   : > { %v851_v5 = vadd.f32 1.0, %v1607_v4 }
 0x1d5   : > { %1610 = vrcp.f32 %v851_v5 }
 0x1de   : > { %v1609_v6 = vpop.eup %1608 }
 0x1df   : > { %v1869_v8 = vmul.f32 %v1609_v6, %v842_v58 }
 0x1e2   : > { %v1611_v7 = vpop.eup %1610 }
 0x1e3   : > { %v1871_v9 = vmul.f32 %v1611_v7, %v843_v63  ;;  %v1599_v63 = vld [vmem:[%s1948_s15] sm:$0xff]  }
 0x1e5   : > { %v858_v10 = vpack.c.bf16 %v1871_v9, %v1869_v8 }
 0x1e7   : > { %1517 = vmatmul.mubr.msk.bf16.vlgmr.msra.gmra.mxu0 %vm729_vm2, %v858_v10 }
 0x1e8   : > { %1532 = vmatprep.mubr.msk.bf16.mxu0 %vm1657_vm0, %v1656_v1  ;;  %1529 = vmatpush3.bf16.msra.mxu0 %v1594_v22 }
 0x1e9   : > { %1530 = vmatprep.subr.bf16.mxu0 %v1656_v1 }
 0x1ec   : > { %1531 = vmatpush3.bf16.msra.mxu0 %v1595_v23 }
 0x1ed   : > { %1542 = vmatprep.subr.bf16.mxu0 %v1656_v1 }
 0x1ef   : > { %1533 = vmatmul.mubr.msk.bf16.vlgmr.msra.gmra.mxu0 %vm729_vm2, %v1848_v40 }
 0x1f0   : > { %1544 = vmatprep.mubr.msk.bf16.mxu0 %vm1657_vm0, %v1656_v1 }
 0x2a7   : > { %v912_v17 = vpop.f32.mrf.mxu0 }
 0x2a9   : > { %v1518_v18 = vpop.f32.mrf.mxu0 }
 0x2ab   : > { %v915_v19 = vpop.f32.mrf.mxu0 }
 0x2ac   : > { %v1036_v20 = vpack.c.bf16 %v915_v19, %v912_v17 }
 0x2ad   : > { %v1519_v21 = vpop.f32.mrf.mxu0 }
 0x2ae   : > { %1539 = vmatmul.mubr.msk.bf16.vlgmr.msra.gmra.mxu1 %vm729_vm2, %v1036_v20 }
 0x2af   : > { %1552 = vmatprep.mubr.msk.bf16.mxu1 %vm1657_vm0, %v1656_v1  ;;  %v1030_v42 = vpop.f32.mrf.mxu0  ;;  %1549 = vmatpush3.bf16.msra.mxu1 %v1596_v48 }
 0x2b0   : > { %v1111_v46 = vpack.c.bf16 %v1030_v42, %v1030_v42  ;;  %1550 = vmatprep.subr.bf16.mxu1 %v1656_v1 }
 0x2b1   : > { %v1534_v43 = vpop.f32.mrf.mxu0 }
 0x2b2   : > { %v1117_v47 = vsel %vm1115_vm6, %v1111_v46, 0 }
 0x2b3   : > { %v1033_v44 = vpop.f32.mrf.mxu0  ;;  %1543 = vmatpush3.bf16.msra.mxu0 %v1117_v47  ;;  %1551 = vmatpush3.bf16.msra.mxu1 %v1597_v56 }
 0x2b4   : > { %1556 = vmatprep.subr.bf16.mxu0 %v1656_v1 }
 0x2b5   : > { %v1535_v45 = vpop.f32.mrf.mxu0 }
 0x36e   : > { %v1078_v24 = vpop.f32.mrf.mxu1 }
 0x36f   : > { %v1085_v25 = vmul.f32 0.17677669, %v1078_v24 }
 0x370   : > { %v1540_v26 = vpop.f32.mrf.mxu1 }
 0x371   : > { %v1088_v27 = vsel %vm1087_vm5, %v1085_v25, -inf }
 0x372   : > { %1089 = vmax.xlane.f32.xlu0 %v1088_v27  ;;  %v1081_v28 = vpop.f32.mrf.mxu1 }
 0x373   : > { %v1086_v29 = vmul.f32 0.17677669, %v1081_v28 }
 0x374   : > { %v1541_v30 = vpop.f32.mrf.mxu1 }
 0x375   : > { %v1091_v31 = vsel %vm1087_vm5, %v1086_v29, -inf }
 0x376   : > { %1092 = vmax.xlane.f32.xlu0 %v1091_v31 }
 0x3fb   : > { %v1090_v32 = vpop.xlane.xlu0 %1089 }
 0x3fc   : > { %v1094_v33 = vsub.f32 %v1085_v25, %v1090_v32 }
 0x3fe   : > { %v1096_v34 = vmul.f32 1.442695, %v1094_v33 }
 0x3ff   : > { %v1093_v35 = vpop.xlane.xlu0 %1092 }
 0x400   : > { %1612 = vpow2.f32 %v1096_v34  ;;  %v1095_v36 = vsub.f32 %v1086_v29, %v1093_v35 }
 0x402   : > { %v1098_v37 = vmul.f32 1.442695, %v1095_v36 }
 0x404   : > { %1614 = vpow2.f32 %v1098_v37 }
 0x40d   : > { %v1613_v38 = vpop.eup %1612 }
 0x40e   : > { %v1100_v39 = vsel %vm1087_vm5, %v1613_v38, 0.0 }
 0x40f   : > { %1101 = vadd.xlane.f32.xlu1 %v1100_v39 }
 0x411   : > { %v1615_v40 = vpop.eup %1614 }
 0x412   : > { %v1103_v41 = vsel %vm1087_vm5, %v1615_v40, 0.0 }
 0x413   : > { %1104 = vadd.xlane.f32.xlu1 %v1103_v41 }
 0x498   : > { %v1102_v49 = vpop.xlane.xlu1 %1101 }
 0x499   : > { %1616 = vrcp.f32 %v1102_v49 }
 0x49c   : > { %v1105_v50 = vpop.xlane.xlu1 %1104 }
 0x49d   : > { %1618 = vrcp.f32 %v1105_v50 }
 0x4a6   : > { %v1617_v51 = vpop.eup %1616 }
 0x4a7   : > { %v1108_v54 = vmul.f32 %v1617_v51, %v1613_v38 }
 0x4aa   : > { %v1619_v52 = vpop.eup %1618 }
 0x4ab   : > { %v1109_v53 = vmul.f32 %v1619_v52, %v1615_v40 }
 0x4ad   : > { %v1110_v55 = vpack.c.bf16 %v1109_v53, %v1108_v54 }
 0x4af   : > { %1545 = vmatmul.mubr.msk.bf16.vlgmr.msra.gmra.mxu0 %vm1087_vm5, %v1110_v55 }
 0x4b0   : > { %1560 = vmatprep.mubr.msk.bf16.mxu0 %vm1657_vm0, %v1656_v1  ;;  %1557 = vmatpush3.bf16.msra.mxu0 %v1598_v62 }
 0x4b1   : > { %1558 = vmatprep.subr.bf16.mxu0 %v1656_v1 }
 0x4b4   : > { %1559 = vmatpush3.bf16.msra.mxu0 %v1599_v63 }
 0x56f   : > { %v1153_v57 = vpop.f32.mrf.mxu0 }
 0x571   : > { %v1546_v58 = vpop.f32.mrf.mxu0 }
 0x573   : > { %v1156_v59 = vpop.f32.mrf.mxu0 }
 0x574   : > { %v1160_v60 = vpack.c.bf16 %v1156_v59, %v1153_v57 }
 0x575   : > { %v1547_v61 = vpop.f32.mrf.mxu0 }
 0x576   : > { %1553 = vmatmul.mubr.msk.bf16.vlgmr.msra.gmra.mxu1 %vm729_vm2, %v1160_v60 }
 0x636   : > { %v1214_v0 = vpop.f32.mrf.mxu1 }
 0x637   : > { %v1221_v2 = vadd.f32 %v1214_v0, %v1869_v8 }
 0x638   : > { %v1554_v3 = vpop.f32.mrf.mxu1 }
 0x639   : > { %v1449_v4 = vmul.f32 -1.442695, %v1221_v2 }
 0x63a   : > { %v1217_v5 = vpop.f32.mrf.mxu1 }
 0x63b   : > { %1620 = vpow2.f32 %v1449_v4  ;;  %v1222_v6 = vadd.f32 %v1217_v5, %v1871_v9  ;;  %v1451_v9 = vld [vmem:[%s1949_s16] ss:$0 sm:$0xff] }
 0x63c   : > { %v1555_v7 = vpop.f32.mrf.mxu1 }
 0x63d   : > { %v1450_v10 = vmul.f32 -1.442695, %v1222_v6 }
 0x63f   : > { %1622 = vpow2.f32 %v1450_v10 }
 0x648   : > { %v1621_v11 = vpop.eup %1620 }
 0x649   : > { %v1229_v1 = vadd.f32 1.0, %v1621_v11 }
 0x64b   : > { %1624 = vrcp.f32 %v1229_v1 }
 0x64c   : > { %v1623_v12 = vpop.eup %1622 }
 0x64d   : > { %v1230_v13 = vadd.f32 1.0, %v1623_v12 }
 0x64f   : > { %1626 = vrcp.f32 %v1230_v13 }
 0x658   : > { %v1625_v14 = vpop.eup %1624 }
 0x659   : > { %v1235_v16 = vmul.f32 %v1625_v14, %v1221_v2 }
 0x65c   : > { %v1627_v15 = vpop.eup %1626 }
 0x65d   : > { %v1236_v8 = vmul.f32 %v1627_v15, %v1222_v6 }
 0x65f   : > { %v1237_v17 = vpack.c.bf16 %v1236_v8, %v1235_v16 }
 0x661   : > { %1561 = vmatmul.mubr.msk.bf16.vlgmr.msra.gmra.mxu0 %vm729_vm2, %v1237_v17 }
 0x721   : > { %v1298_v18 = vpop.f32.mrf.mxu0 }
 0x722   : > { %v1299_v19 = vadd.f32 %v1451_v9, %v1298_v18 }
 0x723   : > { %v1562_v20 = vpop.f32.mrf.mxu0 }
 0x724   : > { %1305 = vst.msk [vmem:[%s613_s19] sm:$0xff] %vm789_vm4, %v1299_v19 }
 0x725   : > { %v1301_v21 = vpop.f32.mrf.mxu0 }
 0x726   : > { %v1302_v22 = vadd.f32 %v1451_v9, %v1301_v21 }
 0x727   : > { %v1563_v23 = vpop.f32.mrf.mxu0 }
 0x728   : > { %1306 = vst.msk [vmem:[%s613_s19 + $0x8] sm:$0xff] %vm789_vm4, %v1302_v22 }
 0x729 PF: > { %s28_s24 = sadd.s32 1, %s1653_s24  }
 0x72a   : > { %p25_p1 = scmp.ge.s32.totalorder %s28_s24, 4  }
 0x72c   :  { %27 = sbr.rel (!%p25_p1) target bundleno = 4 (0x4), region = 132 }
 0x731   :  { %1328 = vsyncpa [#allocation3], 1 }
 0x732   :  { %1330 = vsyncpa [#allocation3 + $0x1], 1 }

</bundles_post_ra>
